<compile_context>
chip_gen: v6e
topology: v6e:2x2x1
jax: 0.10.0
libtpu: 0.0.40
codegen_flags: <defaults>
</compile_context>

<pallas_src>
import functools
import math

import jax
import jax.numpy as jnp
from jax.experimental import pallas as pl
from jax.experimental.pallas import tpu as pltpu


# --------------------------------------------------------------------------
# Kernels
# --------------------------------------------------------------------------

def _ccem_fused_kernel(x_ref, w1t_ref, b1_ref, w2t_ref, b2_ref, o_ref, *, inv_hw):
    """Single pass: global max+avg pool, 1x1-conv MLP, sigmoid, scale.

    x_ref : (TB, Ck, HW)   w1t_ref: (Ck, Hk)   b1_ref: (1, Hk)
    w2t_ref: (Hk, Ck)      b2_ref : (1, Ck)    o_ref : (TB, Ck, HW)
    """
    xv = x_ref[...].astype(jnp.float32)                 # (TB, Ck, HW), f32 math
    mx = jnp.max(xv, axis=-1)                           # (TB, Ck) global max pool
    sm = jnp.sum(xv, axis=-1)                           # (TB, Ck) f32 accumulation
    pooled = mx + sm * inv_hw                           # max pool + avg pool

    h = jnp.dot(pooled, w1t_ref[...],
                preferred_element_type=jnp.float32) + b1_ref[...]   # (TB, Hk)
    h = jnp.maximum(h, 0.0)
    s = jnp.dot(h, w2t_ref[...],
                preferred_element_type=jnp.float32) + b2_ref[...]   # (TB, Ck)
    s = jax.nn.sigmoid(s)

    o_ref[...] = (xv * s[:, :, None]).astype(o_ref.dtype)


def _ccem_pool_kernel(x_ref, w1t_ref, b1_ref, w2t_ref, b2_ref, s_ref,
                      mx_ref, sm_ref, *, hw, thw, inv_hw, needs_mask):
    """Two-phase fallback, phase 1: streamed max/sum over spatial tiles.

    Grid: (batch blocks [parallel], HW blocks [arbitrary, reduction last]).
    Accumulates into VMEM scratch, runs the MLP + sigmoid on the last HW step.
    """
    hidx = pl.program_id(1)

    @pl.when(hidx == 0)
    def _init():
        mx_ref[...] = jnp.full_like(mx_ref, -jnp.inf)
        sm_ref[...] = jnp.zeros_like(sm_ref)

    xv = x_ref[...].astype(jnp.float32)                 # (TB, Ck, THW)
    if needs_mask:
        # Last spatial block may read past HW (Pallas pads edge blocks with
        # unspecified data): mask those lanes out of both reductions.
        col = jax.lax.broadcasted_iota(jnp.int32, xv.shape, 2) + hidx * thw
        valid = col < hw
        mx_part = jnp.max(jnp.where(valid, xv, -jnp.inf), axis=-1)
        sm_part = jnp.sum(jnp.where(valid, xv, 0.0), axis=-1)
    else:
        mx_part = jnp.max(xv, axis=-1)
        sm_part = jnp.sum(xv, axis=-1)

    mx_ref[...] = jnp.maximum(mx_ref[...], mx_part)
    sm_ref[...] = sm_ref[...] + sm_part

    @pl.when(hidx == pl.num_programs(1) - 1)
    def _finalize():
        pooled = mx_ref[...] + sm_ref[...] * inv_hw      # (TB, Ck)
        h = jnp.dot(pooled, w1t_ref[...],
                    preferred_element_type=jnp.float32) + b1_ref[...]
        h = jnp.maximum(h, 0.0)
        s = jnp.dot(h, w2t_ref[...],
                    preferred_element_type=jnp.float32) + b2_ref[...]
        s_ref[...] = jax.nn.sigmoid(s).astype(s_ref.dtype)


def _ccem_scale_kernel(x_ref, s_ref, o_ref):
    """Two-phase fallback, phase 2: out = x * s (per-channel broadcast)."""
    xv = x_ref[...].astype(jnp.float32)                 # (TB, Ck, THW)
    o_ref[...] = (xv * s_ref[...][:, :, None]).astype(o_ref.dtype)


# --------------------------------------------------------------------------
# Wrapper helpers
# --------------------------------------------------------------------------

def _vmem_budget():
    """Generation-aware (target_tile_bytes, vmem_limit_cap, min_grid_steps)."""
    cap = 128 << 20
    try:
        info = pltpu.get_tpu_info()
        cap = int(getattr(info, "vmem_capacity_bytes", cap))
    except Exception:
        pass
    if cap <= (80 << 20):
        # v7x class: 64 MiB per TensorCore, 2 TCs per chip -> smaller tiles,
        # tighter limit with headroom, and >= 4 grid steps so each core gets
        # pipelined (prefetch i+1 / writeback i-1) work.
        target = 7 << 20
        limit_cap = min(52 << 20, cap - (8 << 20))
        min_steps = 4
    else:
        # v5e / v6e: 128 MiB VMEM, single TensorCore.
        target = 14 << 20
        limit_cap = min(100 << 20, cap - (24 << 20))
        min_steps = 2
    return target, limit_cap, min_steps


def _choose_tb(bk, slab_bytes, target_bytes, min_steps):
    """Largest batch tile whose (TB, Ck, HW) slab stays near the target while
    keeping at least `min_steps` grid steps when the batch allows it."""
    tb = max(1, min(bk, int(target_bytes) // max(1, int(slab_bytes))))
    if bk >= 2:
        m = min(min_steps, bk)
        tb = min(tb, max(1, bk // m))
    return tb


def _weight_specs(shapes, grid_rank, single_buffer):
    """Constant-index BlockSpecs for the (tiny) MLP params.  When they are big
    enough to matter, request single buffering: they never change across grid
    steps, so double-buffering them only burns VMEM."""
    imap = (lambda b: (0, 0)) if grid_rank == 1 else (lambda b, h: (0, 0))
    specs = []
    for shp in shapes:
        spec = None
        if single_buffer:
            try:
                spec = pl.BlockSpec(shp, imap, pipeline_mode=pl.Buffered(1))
            except Exception:  # older jax without pipeline_mode / Buffered
                spec = None
        if spec is None:
            spec = pl.BlockSpec(shp, imap)
        specs.append(spec)
    return specs


# --------------------------------------------------------------------------
# Public entry point
# --------------------------------------------------------------------------

def new_ccem(x, w1, b1, w2, b2, *, force_two_phase=False, target_tile_bytes=None):
    """NewCCEM forward.

    x: (B, C, H, W).  w1: (4C, C), b1: (4C,), w2: (C, 4C), b2: (C,).
    Returns (B, C, H, W) = x * sigmoid(conv2(relu(conv1(maxpool(x)+avgpool(x))))).
    """
    B, C, H, W = x.shape
    HW = H * W
    C4, Cin = w1.shape
    Cout, C4b = w2.shape
    assert Cin == C and C4b == C4
    # The final x * weights broadcast requires out_channels == in_channels.
    assert Cout == C, "NewCCEM scaling requires out_channels == in_channels"

    itemsize = jnp.dtype(x.dtype).itemsize
    sub = max(8, (8 * 4) // itemsize)     # sublane rows of one tile: 8 f32 / 16 bf16

    # ---- batch folding: restore sublane density when C % sub != 0 ----------
    fold = 1
    if C % sub != 0:
        f = sub // math.gcd(C, sub)
        if f > 1 and B % f == 0:
            fold = f
    Bk, Ck, Hk = B // fold, C * fold, C4 * fold

    xk = x.reshape(Bk, Ck, HW)            # free row-major reshape

    w1t = jnp.transpose(w1)               # (C, 4C)
    w2t = jnp.transpose(w2)               # (4C, C)
    b1v, b2v = b1, b2
    if fold > 1:
        # Block-diagonal weights keep folded batch elements independent.
        w1t = jnp.kron(jnp.eye(fold, dtype=w1t.dtype), w1t)   # (Ck, Hk)
        w2t = jnp.kron(jnp.eye(fold, dtype=w2t.dtype), w2t)   # (Hk, Ck)
        b1v = jnp.tile(b1, fold)
        b2v = jnp.tile(b2, fold)
    b1r = b1v.reshape(1, Hk)
    b2r = b2v.reshape(1, Ck)

    # ---- generation-aware budgets ------------------------------------------
    target_bytes, limit_cap, min_steps = _vmem_budget()
    if target_tile_bytes is not None:
        target_bytes = int(target_tile_bytes)

    w_itemsize = jnp.dtype(w1t.dtype).itemsize
    weights_bytes = (w1t.size + w2t.size + b1r.size + b2r.size) * w_itemsize
    single_buffer_weights = weights_bytes > (2 << 20)
    w_buf = 1 if single_buffer_weights else 2
    headroom = 2 << 20

    slab_bytes = Ck * HW * itemsize       # one folded batch-group's (Ck, HW) slab
    fused_fits = (4 * slab_bytes + w_buf * weights_bytes + headroom) <= limit_cap
    inv_hw = float(1.0 / HW)

    if fused_fits and not force_two_phase:
        # ---- single-pass fused path: whole spatial extent resident per step --
        eff_target = min(target_bytes,
                         max(slab_bytes,
                             (limit_cap - w_buf * weights_bytes - headroom) // 4))
        TB = _choose_tb(Bk, slab_bytes, eff_target, min_steps)
        grid = (pl.cdiv(Bk, TB),)
        needed = 4 * TB * slab_bytes + w_buf * weights_bytes + headroom
        vmem_limit = int(min(max(needed, 32 << 20), limit_cap))

        wspecs = _weight_specs([(Ck, Hk), (1, Hk), (Hk, Ck), (1, Ck)],
                               grid_rank=1, single_buffer=single_buffer_weights)
        out = pl.pallas_call(
            functools.partial(_ccem_fused_kernel, inv_hw=inv_hw),
            out_shape=jax.ShapeDtypeStruct((Bk, Ck, HW), x.dtype),
            grid_spec=pltpu.PrefetchScalarGridSpec(
                num_scalar_prefetch=0,
                grid=grid,
                in_specs=[pl.BlockSpec((TB, Ck, HW), lambda b: (b, 0, 0))] + wspecs,
                out_specs=pl.BlockSpec((TB, Ck, HW), lambda b: (b, 0, 0)),
            ),
            compiler_params=pltpu.CompilerParams(
                dimension_semantics=("parallel",),
                vmem_limit_bytes=vmem_limit),
        )(xk, w1t, b1r, w2t, b2r)
        return out.reshape(B, C, H, W)

    # ---- two-phase fallback: (Ck, HW) slab too big for VMEM -> tile HW ------
    TB2 = Bk if Bk < 8 else 8             # keeps the s-output sublane axis aligned
    per_lane_bytes = TB2 * Ck * itemsize
    tile_budget = max(1, (limit_cap - w_buf * weights_bytes - headroom) // 4)
    thw = min(target_bytes, tile_budget) // per_lane_bytes
    thw = max(128, (thw // 128) * 128)    # lane-aligned spatial tile
    thw = min(thw, pl.cdiv(HW, 128) * 128)
    nb, nh = pl.cdiv(Bk, TB2), pl.cdiv(HW, thw)
    needs_mask = (HW % thw) != 0
    tile_bytes = TB2 * Ck * thw * itemsize
    needed = 4 * tile_bytes + w_buf * weights_bytes + headroom
    vmem_limit = int(min(max(needed, 32 << 20), limit_cap))

    wspecs = _weight_specs([(Ck, Hk), (1, Hk), (Hk, Ck), (1, Ck)],
                           grid_rank=2, single_buffer=single_buffer_weights)

    # Phase 1: stream x over HW tiles -> per-channel sigmoid weights s (Bk, Ck).
    s = pl.pallas_call(
        functools.partial(_ccem_pool_kernel, hw=HW, thw=thw, inv_hw=inv_hw,
                          needs_mask=needs_mask),
        out_shape=jax.ShapeDtypeStruct((Bk, Ck), jnp.float32),
        grid_spec=pltpu.PrefetchScalarGridSpec(
            num_scalar_prefetch=0,
            grid=(nb, nh),
            in_specs=[pl.BlockSpec((TB2, Ck, thw), lambda b, h: (b, 0, h))] + wspecs,
            out_specs=pl.BlockSpec((TB2, Ck), lambda b, h: (b, 0)),
            scratch_shapes=[pltpu.VMEM((TB2, Ck), jnp.float32),
                            pltpu.VMEM((TB2, Ck), jnp.float32)],
        ),
        compiler_params=pltpu.CompilerParams(
            dimension_semantics=("parallel", "arbitrary"),
            vmem_limit_bytes=vmem_limit),
    )(xk, w1t, b1r, w2t, b2r)

    # Phase 2: re-stream x and apply the per-channel scale.
    out = pl.pallas_call(
        _ccem_scale_kernel,
        out_shape=jax.ShapeDtypeStruct((Bk, Ck, HW), x.dtype),
        grid_spec=pltpu.PrefetchScalarGridSpec(
            num_scalar_prefetch=0,
            grid=(nb, nh),
            in_specs=[pl.BlockSpec((TB2, Ck, thw), lambda b, h: (b, 0, h)),
                      pl.BlockSpec((TB2, Ck), lambda b, h: (b, 0))],
            out_specs=pl.BlockSpec((TB2, Ck, thw), lambda b, h: (b, 0, h)),
        ),
        compiler_params=pltpu.CompilerParams(
            dimension_semantics=("parallel", "parallel"),
            vmem_limit_bytes=vmem_limit),
    )(xk, s)
    return out.reshape(B, C, H, W)


# --------------------------------------------------------------------------
# Reference + self-test
# --------------------------------------------------------------------------

def _reference(x, w1, b1, w2, b2):
    """Pure-JAX reference mirroring the PyTorch forward."""
    mx = jnp.max(x, axis=(2, 3), keepdims=True)
    av = jnp.mean(x, axis=(2, 3), keepdims=True)
    p = (mx + av)[..., 0, 0]                               # (B, C)
    h = jnp.maximum(p @ w1.T + b1, 0.0)                    # (B, 4C)
    s = jax.nn.sigmoid(h @ w2.T + b2)                      # (B, C)
    return x * s[:, :, None, None]


def _make_params(key, C):
    C4 = 4 * C
    k1, kb1, k2, kb2 = jax.random.split(key, 4)
    bound1 = 1.0 / (C ** 0.5)
    w1 = jax.random.uniform(k1, (C4, C), jnp.float32, -bound1, bound1)
    b1 = jax.random.uniform(kb1, (C4,), jnp.float32, -bound1, bound1)
    bound2 = 1.0 / (C4 ** 0.5)
    w2 = jax.random.uniform(k2, (C, C4), jnp.float32, -bound2, bound2)
    b2 = jax.random.uniform(kb2, (C,), jnp.float32, -bound2, bound2)
    return w1, b1, w2, b2


def _check(y, y_ref):
    assert y.shape == y_ref.shape
    assert jnp.allclose(y, y_ref, atol=1e-5, rtol=1e-5), "mismatch vs reference"


if __name__ == "__main__":
    key = jax.random.PRNGKey(0)
    k0, k1, k2, k3, k4, k5 = jax.random.split(key, 6)

    # Case 1: module-sized example (B=2, C=4, 16x16) -> fused path with C=4
    # batch-folded to a fully packed (1, 8, 256) tile.
    B, C, H, W = 2, 4, 16, 16
    x = jax.random.normal(k0, (B, C, H, W), dtype=jnp.float32)
    w1, b1, w2, b2 = _make_params(k1, C)
    y = jax.block_until_ready(new_ccem(x, w1, b1, w2, b2))
    _check(y, _reference(x, w1, b1, w2, b2))

    # Case 2: batch not divisible by the chosen tile (fused path, partial edge
    # batch block handled by the pl.cdiv grid).
    B, C, H, W = 5, 8, 16, 16
    x = jax.random.normal(k2, (B, C, H, W), dtype=jnp.float32)
    w1, b1, w2, b2 = _make_params(k3, C)
    y = jax.block_until_ready(new_ccem(x, w1, b1, w2, b2))
    _check(y, _reference(x, w1, b1, w2, b2))

    # Case 3: force the HW-tiled two-phase fallback (large-feature-map regime)
    # with a small tile override so multiple spatial steps + the pl.when
    # init/finalize accumulator path are exercised (HW chosen 128-aligned so
    # every spatial block is full).
    B, C, H, W = 3, 8, 24, 32
    x = jax.random.normal(k4, (B, C, H, W), dtype=jnp.float32)
    w1, b1, w2, b2 = _make_params(k5, C)
    y = jax.block_until_ready(new_ccem(x, w1, b1, w2, b2,
                                       force_two_phase=True,
                                       target_tile_bytes=8 * 1024))
    _check(y, _reference(x, w1, b1, w2, b2))

    print("KERNEL_OK")
</pallas_src>

<mosaic_0001>
module attributes {stable_mosaic.version = 11 : i64} {
  func.func @_ccem_fused_kernel(%arg0: i32, %arg1: memref<1x8x256xf32, #tpu.memory_space<vmem>>, %arg2: memref<8x32xf32, #tpu.memory_space<vmem>>, %arg3: memref<1x32xf32, #tpu.memory_space<vmem>>, %arg4: memref<32x8xf32, #tpu.memory_space<vmem>>, %arg5: memref<1x8xf32, #tpu.memory_space<vmem>>, %arg6: memref<1x8x256xf32, #tpu.memory_space<vmem>>) attributes {dimension_semantics = [#tpu.dimension_semantics<parallel>], iteration_bounds = array<i64: 1>, scalar_prefetch = 0 : i64, scratch_operands = 0 : i64, tpu.core_type = #tpu.core_type<tc>, window_params = [{transform_indices = @transform_0, window_bounds = array<i64: 1, 8, 256>}, {pipeline_mode = #tpu.pipeline_mode<synchronous>, transform_indices = @transform_1, window_bounds = array<i64: 8, 32>}, {pipeline_mode = #tpu.pipeline_mode<synchronous>, transform_indices = @transform_2, window_bounds = array<i64: 1, 32>}, {pipeline_mode = #tpu.pipeline_mode<synchronous>, transform_indices = @transform_3, window_bounds = array<i64: 32, 8>}, {pipeline_mode = #tpu.pipeline_mode<synchronous>, transform_indices = @transform_4, window_bounds = array<i64: 1, 8>}, {transform_indices = @transform_5, window_bounds = array<i64: 1, 8, 256>}]} {
    %c0 = arith.constant 0 : index
    %c0_0 = arith.constant 0 : index
    %c0_1 = arith.constant 0 : index
    %0 = vector.load %arg1[%c0, %c0_0, %c0_1] : memref<1x8x256xf32, #tpu.memory_space<vmem>>, vector<1x8x256xf32>
    %cst = arith.constant dense<0xFF800000> : vector<1x8xf32>
    %1 = vector.multi_reduction <maximumf>, %0, %cst [2] : vector<1x8x256xf32> to vector<1x8xf32>
    %cst_2 = arith.constant dense<0.000000e+00> : vector<1x8xf32>
    %2 = vector.multi_reduction <add>, %0, %cst_2 [2] : vector<1x8x256xf32> to vector<1x8xf32>
    %cst_3 = arith.constant 3.906250e-03 : f32
    %3 = vector.broadcast %cst_3 : f32 to vector<1x8xf32>
    %4 = arith.mulf %2, %3 : vector<1x8xf32>
    %5 = arith.addf %1, %4 : vector<1x8xf32>
    %c0_4 = arith.constant 0 : index
    %c0_5 = arith.constant 0 : index
    %6 = vector.load %arg2[%c0_4, %c0_5] : memref<8x32xf32, #tpu.memory_space<vmem>>, vector<8x32xf32>
    %cst_6 = arith.constant dense<0.000000e+00> : vector<1x32xf32>
    %7 = tpu.matmul %5, %6, %cst_6 {dimension_numbers = #tpu.dot_dimension_numbers<[1], [0], [0], [1], [0, 0, 1, 1], [], []>} : vector<1x8xf32>, vector<8x32xf32>, vector<1x32xf32> -> vector<1x32xf32>
    %c0_7 = arith.constant 0 : index
    %c0_8 = arith.constant 0 : index
    %8 = vector.load %arg3[%c0_7, %c0_8] : memref<1x32xf32, #tpu.memory_space<vmem>>, vector<1x32xf32>
    %9 = arith.addf %7, %8 : vector<1x32xf32>
    %cst_9 = arith.constant 0.000000e+00 : f32
    %10 = vector.broadcast %cst_9 : f32 to vector<1x32xf32>
    %11 = arith.maximumf %9, %10 : vector<1x32xf32>
    %c0_10 = arith.constant 0 : index
    %c0_11 = arith.constant 0 : index
    %12 = vector.load %arg4[%c0_10, %c0_11] : memref<32x8xf32, #tpu.memory_space<vmem>>, vector<32x8xf32>
    %cst_12 = arith.constant dense<0.000000e+00> : vector<1x8xf32>
    %13 = tpu.matmul %11, %12, %cst_12 {dimension_numbers = #tpu.dot_dimension_numbers<[1], [0], [0], [1], [0, 0, 1, 1], [], []>} : vector<1x32xf32>, vector<32x8xf32>, vector<1x8xf32> -> vector<1x8xf32>
    %c0_13 = arith.constant 0 : index
    %c0_14 = arith.constant 0 : index
    %14 = vector.load %arg5[%c0_13, %c0_14] : memref<1x8xf32, #tpu.memory_space<vmem>>, vector<1x8xf32>
    %15 = arith.addf %13, %14 : vector<1x8xf32>
    %16 = arith.negf %15 : vector<1x8xf32>
    %17 = math.exp %16 : vector<1x8xf32>
    %cst_15 = arith.constant 1.000000e+00 : f32
    %18 = vector.broadcast %cst_15 : f32 to vector<1x8xf32>
    %19 = arith.addf %18, %17 : vector<1x8xf32>
    %20 = arith.divf %18, %19 : vector<1x8xf32>
    %21 = vector.shape_cast %20 : vector<1x8xf32> to vector<1x8x1xf32>
    %22 = vector.broadcast %21 : vector<1x8x1xf32> to vector<1x8x256xf32>
    %23 = arith.mulf %0, %22 : vector<1x8x256xf32>
    %c0_16 = arith.constant 0 : index
    %c0_17 = arith.constant 0 : index
    %c0_18 = arith.constant 0 : index
    %24 = vector.load %arg6[%c0_16, %c0_17, %c0_18] : memref<1x8x256xf32, #tpu.memory_space<vmem>>, vector<1x8x256xf32>
    tpu.vector_store %arg6[%c0_16, %c0_17, %c0_18], %23 {strides = array<i32>} : memref<1x8x256xf32, #tpu.memory_space<vmem>>, vector<1x8x256xf32>,
    return
  }
  func.func @transform_0(%arg0: i32) -> (i32, i32, i32) {
    %c0_i32 = arith.constant 0 : i32
    %c0_i32_0 = arith.constant 0 : i32
    %c0_i32_1 = arith.constant 0 : i32
    return %arg0, %c0_i32, %c0_i32_0 : i32, i32, i32
  }
  func.func @transform_1(%arg0: i32) -> (i32, i32) {
    %c0_i32 = arith.constant 0 : i32
    %c0_i32_0 = arith.constant 0 : i32
    %c0_i32_1 = arith.constant 0 : i32
    return %c0_i32, %c0_i32_0 : i32, i32
  }
  func.func @transform_2(%arg0: i32) -> (i32, i32) {
    %c0_i32 = arith.constant 0 : i32
    %c0_i32_0 = arith.constant 0 : i32
    %c0_i32_1 = arith.constant 0 : i32
    return %c0_i32, %c0_i32_0 : i32, i32
  }
  func.func @transform_3(%arg0: i32) -> (i32, i32) {
    %c0_i32 = arith.constant 0 : i32
    %c0_i32_0 = arith.constant 0 : i32
    %c0_i32_1 = arith.constant 0 : i32
    return %c0_i32, %c0_i32_0 : i32, i32
  }
  func.func @transform_4(%arg0: i32) -> (i32, i32) {
    %c0_i32 = arith.constant 0 : i32
    %c0_i32_0 = arith.constant 0 : i32
    %c0_i32_1 = arith.constant 0 : i32
    return %c0_i32, %c0_i32_0 : i32, i32
  }
  func.func @transform_5(%arg0: i32) -> (i32, i32, i32) {
    %c0_i32 = arith.constant 0 : i32
    %c0_i32_0 = arith.constant 0 : i32
    %c0_i32_1 = arith.constant 0 : i32
    return %arg0, %c0_i32, %c0_i32_0 : i32, i32, i32
  }
}

</mosaic_0001>

<bundles_post_ra>
// kernel: tpu_custom_call.1
= control target key start
LH: loop header
LB: loop body
LE: loop exit
PB: predicated region body
PF: predicated region fallthrough
CT: control target
= control target key end

     0   :  { %s342_s0 = inlined_call_operand.vmem [shape: f32[1,8,256], index: 0, kind: input, shape index: {}]   ;;  %s343_s1 = inlined_call_operand.vmem [shape: f32[8,32], index: 1, kind: input, shape index: {}]   ;;  %s344_s2 = inlined_call_operand.vmem [shape: f32[1,32], index: 2, kind: input, shape index: {}]   ;;  %s345_s3 = inlined_call_operand.vmem [shape: f32[32,8], index: 3, kind: input, shape index: {}]   ;;  %s346_s4 = inlined_call_operand.vmem [shape: f32[1,8], index: 4, kind: input, shape index: {}]   ;;  %s347_s5 = inlined_call_operand.hbm [shape: f32[1,8,256], index: 5, kind: output, shape index: {}]  }
   0x1   :  { %v21_v0 = vld [vmem:[%s342_s0] sm:$0xff]  ;;  %v22_v1 = vld [vmem:[%s342_s0 + $0x8] sm:$0xff] }
   0x2   :  { %10 = vsyncpa [#allocation3], 0  ;;  %v26_v2 = vadd.f32 %v22_v1, %v21_v0  ;;  %v23_v3 = vmax.f32 %v21_v0, %v22_v1  ;;  %v279_v4 = vmov 0.0   ;;  %v31_v5 = vld [vmem:[%s343_s1] sm:$0xff]  ;;  %vm280_vm0 = vmmov 0   ;;  %v117_v6 = vld [vmem:[%s345_s3 + $0x18] sm:$0xff] }
   0x3   :  { %234 = vmatprep.subr.mxu0 %v279_v4  ;;  %239 = vmatprep.subr.mxu1 %v279_v4  ;;  %v34_v7 = vlaneseq  ;;  %vm40_vm1 = vcmask 64512   ;;  %v116_v16 = vld [vmem:[%s345_s3 + $0x10] sm:$0xff]  ;;  %v115_v17 = vld [vmem:[%s345_s3 + $0x8] sm:$0xff]  ;;  %v114_v18 = vld [vmem:[%s345_s3] sm:$0xff]  ;;  %vm119_vm2 = vcmask 261120  }
   0x4   :  { %27 = vadd.xlane.f32.xlu0 %v26_v2  ;;  %235 = vmatpush3.msra.mxu0 %v31_v5  ;;  %v32_v19 = vld [vmem:[%s344_s2] sm:$0x1]  ;;  %s281_s2 = smov [#allocation2]  }
   0x5   :  { %236 = vmatprep.mubr.msk.f32.mxu0 %vm280_vm0, %v279_v4  ;;  %247 = vmatprep.mubr.msk.f32.mxu1 %vm280_vm0, %v279_v4  ;;  %v35_v8 = vand.u32 127, %v34_v7  ;;  %v37_v9 = vshrl.u32 %v34_v7, 7  ;;  %v118_v24 = vld [vmem:[%s346_s4] sm:$0x1]  ;;  %s216_s3 = sshll.u32 %s281_s2, 4  ;;  %s217_s3 = int_to_ptr.vmem [resolvable:$true] %s216_s3 }
   0x6   :  { %240 = vmatpush3.msra.mxu1 %v117_v6  ;;  %s257_s4 = scalar_lea.vmem %s217_s3, 256  ;;  %p262_p1 = scmp.lt.s32.totalorder %s217_s3, %s217_s3 }
   0x7   :  { %241 = vmatprep.subr.mxu1 %v279_v4  ;;  %v38_v12 = vsub.s32 %v35_v8, %v37_v9  ;;  %v201_v31 = vsub.s32 0, %v37_v9  ;;  %p258_p0 = scmp.ne.s32.totalorder %s217_s3, %s257_s4  ;;  %p263_p2 = scmp.lt.s32.totalorder %s257_s4, %s257_s4 }
   0x8   :  { %24 = vmax.xlane.f32.xlu0 %v23_v3  ;;  %242 = vmatpush3.msra.mxu1 %v116_v16 }
   0x9   :  { %243 = vmatprep.subr.mxu1 %v279_v4  ;;  %p264_p3 = por %p263_p2, %p262_p1 }
   0xa   :  { %244 = vmatpush3.msra.mxu1 %v115_v17 }
   0xb   :  { %245 = vmatprep.subr.mxu1 %v279_v4  ;;  %p265_p4 = pnand %p264_p3, %p258_p0 }
   0xc   :  { %246 = vmatpush3.msra.mxu1 %v114_v18 }
  0x8d   :  { %v28_v10 = vpop.xlane.xlu0 %27 }
  0x8e   :  { %v29_v11 = vmul.f32 0.00390625, %v28_v10 }
  0x91   :  { %v25_v13 = vpop.xlane.xlu0 %24 }
  0x92   :  { %v30_v14 = vadd.f32 %v29_v11, %v25_v13 }
  0x94   :  { %v39_v15 = vrot.slane %v30_v14, %v38_v12 }
  0x96   :  { %237 = vmatmul.mubr.msk.f32.vlgmr.msra.gmra.mxu0 %vm40_vm1, %v39_v15 }
 0x156   :  { %v109_v20 = vpop.f32.mrf.mxu0 }
 0x157   :  { %v110_v21 = vadd.f32 %v109_v20, %v32_v19 }
 0x158   :  { %v238_v22 = vpop.f32.mrf.mxu0 }
 0x159   :  { %v113_v23 = vmax.f32 %v110_v21, 0.0 }
 0x15b   :  { %248 = vmatmul.mubr.msk.f32.vlgmr.msra.gmra.mxu1 %vm119_vm2, %v113_v23 }
 0x21b   :  { %v189_v25 = vpop.f32.mrf.mxu1 }
 0x21c   :  { %v190_v26 = vadd.f32 %v189_v25, %v118_v24 }
 0x21d   :  { %v249_v27 = vpop.f32.mrf.mxu1 }
 0x21e   :  { %v226_v28 = vmul.f32 -1.442695, %v190_v26 }
 0x220   :  { %253 = vpow2.f32 %v226_v28 }
 0x22d   :  { %v254_v29 = vpop.eup %253 }
 0x22e   :  { %v196_v30 = vadd.f32 1.0, %v254_v29 }
 0x230   :  { %255 = vrcp.f32 %v196_v30 }
 0x23d   :  { %v256_v32 = vpop.eup %255 }
 0x23e   :  { %v202_v33 = vrot.slane %v256_v32, %v201_v31 }
 0x240   :  { %204 = vbcast.lane.b32.xlu1 %v202_v33, 256 }
 0x2b2   :  { %v205_v34 = vpop.permute.xlu1 %204 }
 0x2b3   :  { %v206_v35 = vmul.f32 %v205_v34, %v21_v0  ;;  %v207_v36 = vmul.f32 %v205_v34, %v22_v1 }
 0x2b5   :  { %208 = vst [vmem:[#allocation2] sm:$0xff] %v206_v35  ;;  %209 = vst [vmem:[#allocation2 + $0x8] sm:$0xff] %v207_v36 }
 0x2b6   :  { %268 = shalt.err (!%p265_p4)
}
 0x2b7   :  { %219 = dma.vmem_to_hbm [thread:$0]  %s217_s3, 256, %s347_s5, [#allocation3]  }
 0x2b8   :  { %277 = dma.done.wait [#allocation3], 256  }
 0x2b9   :  { %278 = vsyncadd [#allocation3], 4294967040 }
 0x2ba   :  { %223 = vsyncpa [#allocation3], 1 }

</bundles_post_ra>
